<compile_context>
chip_gen: v5e
topology: v5e:2x2
jax: 0.10.0
libtpu: 0.0.40
codegen_flags: <defaults>
</compile_context>

<pallas_src>
import functools

import jax
import jax.numpy as jnp
from jax import lax
from jax.experimental import pallas as pl
from jax.experimental.pallas import tpu as pltpu


# ---------------------------------------------------------------------------
# Pallas kernel
# ---------------------------------------------------------------------------
def _kwinners_kernel(*refs, k, n, use_boost, method):
    """Per-row top-k winner-take-all with duty-cycle boosting.

    refs = (x_ref[, boost_ref], out_ref)
      x_ref:     (TB, n) float32
      boost_ref: (1, n)  float32   (precomputed exp((k/n - duty)*beta))
      out_ref:   (TB, n) float32
    """
    if use_boost:
        x_ref, boost_ref, out_ref = refs
    else:
        x_ref, out_ref = refs

    # Note: do NOT keep a separate `x` binding live across the whole select;
    # x_ref is re-read only in the final output write.
    boosted = x_ref[...] * boost_ref[...] if use_boost else x_ref[...]

    zero = jnp.float32(0.0)
    col = lax.broadcasted_iota(jnp.int32, (1, n), 1)          # lane indices

    if method == "peel":
        # k iterations, 2 XLU reductions each; good for small k.
        # Winner detection via `work == -inf` assumes finite inputs (no NaN,
        # no -inf in x or in boosted after the boost multiply).
        neg_inf = jnp.float32(-jnp.inf)

        def body(_, work):
            row_max = jnp.max(work, axis=-1, keepdims=True)                   # (TB,1)
            idx = jnp.min(jnp.where(work == row_max, col, jnp.int32(n)),
                          axis=-1, keepdims=True)                             # (TB,1)
            return jnp.where(col == idx, neg_inf, work)

        work = lax.fori_loop(0, k, body, boosted, unroll=True)
        keep = work == neg_inf           # winners were peeled to -inf
        out_ref[...] = jnp.where(keep, x_ref[...], zero)
        return

    # ------------------------------------------------------------------
    # Radix / bisection threshold select: reduction count independent of k.
    # Map f32 -> order-preserving signed int32 key, bitwise-bisect for the
    # k-th largest key T, then (only if needed) resolve ties at T by lowest
    # lane index.  All counts are int32 -> exact for any realistic n.
    # ------------------------------------------------------------------
    ibits = pltpu.bitcast(boosted, jnp.int32)
    key = ibits ^ ((ibits >> 31) & jnp.int32(0x7FFFFFFF))     # signed order == float order

    ki = jnp.int32(k)
    int_min = jnp.int32(jnp.iinfo(jnp.int32).min)

    # Sign bit: is the k-th largest key >= 0 ?
    cnt0 = jnp.sum((key >= jnp.int32(0)).astype(jnp.int32), axis=-1, keepdims=True)
    prefix = jnp.where(cnt0 >= ki, jnp.int32(0), int_min)     # (TB,1)

    for b in range(30, -1, -1):                               # bits 30..0 (constants)
        trial = prefix + jnp.int32(1 << b)
        cnt = jnp.sum((key >= trial).astype(jnp.int32), axis=-1, keepdims=True)
        prefix = jnp.where(cnt >= ki, trial, prefix)

    threshold = prefix                                        # k-th largest key per row
    gt = key > threshold                                      # strictly-above winners
    is_tie = key == threshold
    c_gt = jnp.sum(gt.astype(jnp.int32), axis=-1, keepdims=True)
    cnt_tie = jnp.sum(is_tie.astype(jnp.int32), axis=-1, keepdims=True)
    need = ki - c_gt                                          # ties to take (>= 1)

    # Common case (no duplicate boosted values at the threshold): every tie is a
    # winner, so the whole tie-break bisection can be skipped.
    n_mismatch = jnp.sum((cnt_tie != need).astype(jnp.int32))
    ties_exact = n_mismatch == 0

    @pl.when(ties_exact)
    def _():
        out_ref[...] = jnp.where(gt | is_tie, x_ref[...], zero)

    @pl.when(jnp.logical_not(ties_exact))
    def _():
        # Tie-break: take the `need` lowest-index lanes with key == threshold.
        key2 = jnp.where(is_tie, jnp.int32(n) - col, jnp.int32(0))  # distinct, >0 on ties
        prefix2 = jnp.zeros_like(threshold)
        for b in range(max(1, int(n).bit_length()) - 1, -1, -1):
            trial2 = prefix2 + jnp.int32(1 << b)
            cnt2 = jnp.sum((key2 >= trial2).astype(jnp.int32), axis=-1, keepdims=True)
            prefix2 = jnp.where(cnt2 >= need, trial2, prefix2)
        select = gt | (key2 >= prefix2)
        out_ref[...] = jnp.where(select, x_ref[...], zero)


# ---------------------------------------------------------------------------
# Wrapper helpers
# ---------------------------------------------------------------------------
def _round_up(v, m):
    return (v + m - 1) // m * m


def _vmem_limit_bytes():
    """Per-generation scoped-VMEM limit: ~3/4 of physical, capped at 100 MiB.

    v5e/v6e (128 MiB physical) -> 96-100 MiB; v7x (64 MiB) -> 48 MiB.
    """
    cap = 64 << 20  # conservative fallback (v7x physical)
    try:
        info = pltpu.get_tpu_info()
        cap = int(getattr(info, "vmem_capacity_bytes", cap))
    except Exception:
        pass
    return max(16 << 20, min(cap * 3 // 4, 100 << 20))


def _choose_tile_rows(batch, n, method, max_tile_rows=None):
    """Footprint-model tile sizing.

    Footprint ~= 2x double-buffered (x, out) blocks (4 slabs) plus the live
    (TB, lanes) f32 temporaries of the kernel body (~3 peel / ~6 radix), where
    lanes is the vreg-padded lane width.  Keep that under ~60% of the scoped
    VMEM limit for compiler-scratch headroom.
    """
    vmem_limit = _vmem_limit_bytes()
    lanes = _round_up(n, 128)                 # internal vreg layout padding
    live_temps = 3 if method == "peel" else 6
    slabs = 4 + live_temps
    budget = int(vmem_limit * 0.6)
    tb = max(8, budget // (slabs * lanes * 4))
    tb = min(tb, 1024 if method == "peel" else 512)
    if max_tile_rows is not None:
        tb = min(tb, int(max_tile_rows))
    # v7x megacore: keep >= 2 grid steps so both TensorCores get work
    # (harmless on single-TC v5e/v6e).
    if batch >= 16:
        tb = min(tb, max(8, (pl.cdiv(batch, 2) // 8) * 8))
    if tb >= batch:
        return batch, vmem_limit              # full-extent block (exempt from %8 rule)
    tb = max(8, (tb // 8) * 8)
    if tb >= batch:
        return batch, vmem_limit
    return tb, vmem_limit


def _kwinners_forward(x, duty, *, k, n, boost_strength,
                      max_tile_rows=None, peel_max_k=20):
    batch = x.shape[0]
    use_boost = boost_strength > 0.0
    # peel ~ 2k full-tile reduce passes; radix ~ 33 + log2(n) with tie-skip.
    method = "peel" if k <= peel_max_k else "radix"

    tb, vmem_limit = _choose_tile_rows(batch, n, method, max_tile_rows)
    grid = (pl.cdiv(batch, tb),)

    # No lane padding / slicing in the wrapper: full-extent last-dim blocks.
    args = [x]
    in_specs = [pl.BlockSpec((tb, n), lambda i: (i, 0))]
    if use_boost:
        # Precompute the boost row once (not per grid step / per call in-kernel).
        boost = jnp.exp((jnp.float32(k / n) - duty.astype(jnp.float32))
                        * jnp.float32(boost_strength)).reshape(1, n)
        args.append(boost)
        in_specs.append(pl.BlockSpec((1, n), lambda i: (0, 0)))

    kernel = functools.partial(_kwinners_kernel, k=k, n=n,
                               use_boost=use_boost, method=method)

    return pl.pallas_call(
        kernel,
        out_shape=jax.ShapeDtypeStruct((batch, n), jnp.float32),
        grid=grid,
        in_specs=in_specs,
        out_specs=pl.BlockSpec((tb, n), lambda i: (i, 0)),
        compiler_params=pltpu.CompilerParams(
            dimension_semantics=("parallel",),
            vmem_limit_bytes=int(vmem_limit)),
    )(*args)


# ---------------------------------------------------------------------------
# Module wrapper (mirrors KWinners.forward)
# ---------------------------------------------------------------------------
class KWinnersPallas:
    def __init__(self, n, k, kInferenceFactor=1.0, boostStrength=1.0,
                 boostStrengthFactor=1.0, dutyCyclePeriod=1000,
                 max_tile_rows=None, peel_max_k=20):
        assert boostStrength >= 0.0
        self.n = n
        self.k = k
        self.kInferenceFactor = kInferenceFactor
        self.boostStrength = boostStrength
        self.boostStrengthFactor = boostStrengthFactor
        self.dutyCyclePeriod = dutyCyclePeriod
        self.learningIterations = 0
        self.training = True
        self.max_tile_rows = max_tile_rows
        self.peel_max_k = peel_max_k
        # register_buffer('dutyCycle', torch.zeros(n))
        self.dutyCycle = jnp.zeros((n,), dtype=jnp.float32)

    def updateBoostStrength(self):
        if self.training:
            self.boostStrength = self.boostStrength * self.boostStrengthFactor

    def updateDutyCycle(self, out):
        # Plain-JAX buffer update (module state, not a kernel):
        #   dutyCycle = (dutyCycle*(period - batch) + (out > 0).sum(0)) / period
        # TODO(synk): training-time duty-cycle EMA is left to XLA; fusing it into
        # the kernel would require an output reduction across grid steps.
        batch = out.shape[0]
        self.learningIterations += batch
        period = min(self.dutyCyclePeriod, self.learningIterations)
        self.dutyCycle = (self.dutyCycle * (period - batch)
                          + (out > 0).sum(axis=0).astype(jnp.float32)) / period

    def __call__(self, x):
        x = jnp.asarray(x, jnp.float32)
        batch, width = x.shape
        assert width == self.n

        if self.k >= self.n:
            # Trivially memory-bound ReLU; let XLA emit it.
            return jnp.maximum(x, 0.0)

        if self.training:
            k = self.k
        else:
            k = min(int(round(self.k * self.kInferenceFactor)), self.n)

        if k >= self.n:
            # Scaled inference k == n: top-n of boosted keeps everything -> x unchanged
            # (matches the PyTorch code path, which only ReLUs when self.k >= self.n).
            out = x
        else:
            out = _kwinners_forward(
                x, self.dutyCycle, k=k, n=self.n,
                boost_strength=float(self.boostStrength),
                max_tile_rows=self.max_tile_rows, peel_max_k=self.peel_max_k)

        if self.training:
            self.updateDutyCycle(out)
        return out


# ---------------------------------------------------------------------------
# Pure-JAX reference
# ---------------------------------------------------------------------------
def kwinners_ref(x, duty, k, n, boost_strength):
    if boost_strength > 0.0:
        boosted = x * jnp.exp((float(k) / float(n) - duty) * boost_strength)[None, :]
    else:
        boosted = x
    _, idx = jax.lax.top_k(boosted, k)
    mask = jnp.zeros_like(x).at[jnp.arange(x.shape[0])[:, None], idx].set(1.0)
    return jnp.where(mask > 0, x, 0.0)


if __name__ == "__main__":
    key = jax.random.PRNGKey(0)
    k1, k2, k3, k4, k5 = jax.random.split(key, 5)

    # 1) Small peel-path test with boosting, n not a multiple of 128 (no padding).
    B, N, K = 2, 32, 4
    x = jax.random.normal(k1, (B, N), dtype=jnp.float32)
    layer = KWinnersPallas(n=N, k=K, boostStrength=1.5)
    layer.dutyCycle = jax.random.uniform(k2, (N,), dtype=jnp.float32)
    duty0 = layer.dutyCycle
    out = jax.block_until_ready(layer(x))
    ref = kwinners_ref(x, duty0, K, N, layer.boostStrength)
    assert out.shape == (B, N)
    assert jnp.allclose(out, ref, atol=1e-6)

    # 2) Radix-path test (k > 20), batch-tiled grid with >= 2 steps.
    B, N, K = 16, 256, 24
    x2 = jax.random.normal(k3, (B, N), dtype=jnp.float32)
    layer2 = KWinnersPallas(n=N, k=K, boostStrength=1.2)
    layer2.dutyCycle = jax.random.uniform(k4, (N,), dtype=jnp.float32)
    duty2 = layer2.dutyCycle
    out2 = jax.block_until_ready(layer2(x2))
    ref2 = kwinners_ref(x2, duty2, K, N, layer2.boostStrength)
    assert jnp.allclose(out2, ref2, atol=1e-6)

    # 3) Ties test on the radix path (forced via peel_max_k): exercises the
    #    pl.when tie-break bisection branch; semantic checks only.
    B, N, K = 4, 96, 20
    vals = 1.0 + jnp.round(jax.random.uniform(k5, (B, N), dtype=jnp.float32) * 4.0) / 4.0
    layer3 = KWinnersPallas(n=N, k=K, boostStrength=0.0, peel_max_k=8)
    out3 = jax.block_until_ready(layer3(vals))
    nz = out3 != 0.0
    assert int(nz.sum()) == B * K
    assert bool(jnp.all(jnp.where(nz, out3 == vals, True)))
    sel_min = jnp.min(jnp.where(nz, vals, jnp.inf), axis=1)
    rej_max = jnp.max(jnp.where(nz, -jnp.inf, vals), axis=1)
    assert bool(jnp.all(sel_min >= rej_max))

    # 4) Multi-step batch-tiled grid with a partial last block (peel path).
    B, N, K = 20, 384, 4
    x4 = jax.random.normal(jax.random.fold_in(key, 7), (B, N), dtype=jnp.float32)
    layer4 = KWinnersPallas(n=N, k=K, boostStrength=1.0, max_tile_rows=8)
    layer4.dutyCycle = jax.random.uniform(jax.random.fold_in(key, 8), (N,),
                                          dtype=jnp.float32)
    duty4 = layer4.dutyCycle
    out4 = jax.block_until_ready(layer4(x4))
    ref4 = kwinners_ref(x4, duty4, K, N, layer4.boostStrength)
    assert jnp.allclose(out4, ref4, atol=1e-6)

    print("KERNEL_OK")
</pallas_src>

<mosaic_0001>
module attributes {stable_mosaic.version = 11 : i64} {
  func.func @_kwinners_kernel(%arg0: i32, %arg1: memref<2x32xf32, #tpu.memory_space<vmem>>, %arg2: memref<1x32xf32, #tpu.memory_space<vmem>>, %arg3: memref<2x32xf32, #tpu.memory_space<vmem>>) attributes {dimension_semantics = [#tpu.dimension_semantics<parallel>], iteration_bounds = array<i64: 1>, scalar_prefetch = 0 : i64, scratch_operands = 0 : i64, tpu.core_type = #tpu.core_type<tc>, window_params = [{transform_indices = @transform_0, window_bounds = array<i64: 2, 32>}, {pipeline_mode = #tpu.pipeline_mode<synchronous>, transform_indices = @transform_1, window_bounds = array<i64: 1, 32>}, {transform_indices = @transform_2, window_bounds = array<i64: 2, 32>}]} {
    %c0 = arith.constant 0 : index
    %c0_0 = arith.constant 0 : index
    %0 = vector.load %arg1[%c0, %c0_0] : memref<2x32xf32, #tpu.memory_space<vmem>>, vector<2x32xf32>
    %c0_1 = arith.constant 0 : index
    %c0_2 = arith.constant 0 : index
    %1 = vector.load %arg2[%c0_1, %c0_2] : memref<1x32xf32, #tpu.memory_space<vmem>>, vector<1x32xf32>
    %2 = vector.broadcast %1 : vector<1x32xf32> to vector<2x32xf32>
    %3 = arith.mulf %0, %2 : vector<2x32xf32>
    %4 = tpu.iota {dimensions = array<i32: 1>} : vector<1x32xi32>
    %cst = arith.constant 0xFF800000 : f32
    %c0_i32 = arith.constant 0 : i32
    %cst_3 = arith.constant dense<0xFF800000> : vector<2xf32>
    %5 = vector.multi_reduction <maximumf>, %3, %cst_3 [1] : vector<2x32xf32> to vector<2xf32>
    %6 = vector.shape_cast %5 : vector<2xf32> to vector<2x1xf32>
    %7 = vector.broadcast %6 : vector<2x1xf32> to vector<2x32xf32>
    %8 = arith.cmpf oeq, %3, %7 : vector<2x32xf32>
    %c32_i32 = arith.constant 32 : i32
    %9 = vector.shape_cast %4 : vector<1x32xi32> to vector<1x32xi32>
    %10 = vector.broadcast %9 : vector<1x32xi32> to vector<2x32xi32>
    %11 = vector.broadcast %c32_i32 : i32 to vector<2x32xi32>
    %12 = arith.select %8, %10, %11 : vector<2x32xi1>, vector<2x32xi32>
    %cst_4 = arith.constant dense<2147483647> : vector<2xi32>
    %13 = vector.multi_reduction <minsi>, %12, %cst_4 [1] : vector<2x32xi32> to vector<2xi32>
    %14 = vector.shape_cast %13 : vector<2xi32> to vector<2x1xi32>
    %15 = vector.broadcast %4 : vector<1x32xi32> to vector<2x32xi32>
    %16 = vector.broadcast %14 : vector<2x1xi32> to vector<2x32xi32>
    %17 = arith.cmpi eq, %15, %16 : vector<2x32xi32>
    %18 = vector.broadcast %cst : f32 to vector<2x32xf32>
    %19 = arith.select %17, %18, %3 : vector<2x32xi1>, vector<2x32xf32>
    %c1_i32 = arith.constant 1 : i32
    %cst_5 = arith.constant dense<0xFF800000> : vector<2xf32>
    %20 = vector.multi_reduction <maximumf>, %19, %cst_5 [1] : vector<2x32xf32> to vector<2xf32>
    %21 = vector.shape_cast %20 : vector<2xf32> to vector<2x1xf32>
    %22 = vector.broadcast %21 : vector<2x1xf32> to vector<2x32xf32>
    %23 = arith.cmpf oeq, %19, %22 : vector<2x32xf32>
    %c32_i32_6 = arith.constant 32 : i32
    %24 = vector.shape_cast %4 : vector<1x32xi32> to vector<1x32xi32>
    %25 = vector.broadcast %24 : vector<1x32xi32> to vector<2x32xi32>
    %26 = vector.broadcast %c32_i32_6 : i32 to vector<2x32xi32>
    %27 = arith.select %23, %25, %26 : vector<2x32xi1>, vector<2x32xi32>
    %cst_7 = arith.constant dense<2147483647> : vector<2xi32>
    %28 = vector.multi_reduction <minsi>, %27, %cst_7 [1] : vector<2x32xi32> to vector<2xi32>
    %29 = vector.shape_cast %28 : vector<2xi32> to vector<2x1xi32>
    %30 = vector.broadcast %4 : vector<1x32xi32> to vector<2x32xi32>
    %31 = vector.broadcast %29 : vector<2x1xi32> to vector<2x32xi32>
    %32 = arith.cmpi eq, %30, %31 : vector<2x32xi32>
    %33 = vector.broadcast %cst : f32 to vector<2x32xf32>
    %34 = arith.select %32, %33, %19 : vector<2x32xi1>, vector<2x32xf32>
    %c2_i32 = arith.constant 2 : i32
    %cst_8 = arith.constant dense<0xFF800000> : vector<2xf32>
    %35 = vector.multi_reduction <maximumf>, %34, %cst_8 [1] : vector<2x32xf32> to vector<2xf32>
    %36 = vector.shape_cast %35 : vector<2xf32> to vector<2x1xf32>
    %37 = vector.broadcast %36 : vector<2x1xf32> to vector<2x32xf32>
    %38 = arith.cmpf oeq, %34, %37 : vector<2x32xf32>
    %c32_i32_9 = arith.constant 32 : i32
    %39 = vector.shape_cast %4 : vector<1x32xi32> to vector<1x32xi32>
    %40 = vector.broadcast %39 : vector<1x32xi32> to vector<2x32xi32>
    %41 = vector.broadcast %c32_i32_9 : i32 to vector<2x32xi32>
    %42 = arith.select %38, %40, %41 : vector<2x32xi1>, vector<2x32xi32>
    %cst_10 = arith.constant dense<2147483647> : vector<2xi32>
    %43 = vector.multi_reduction <minsi>, %42, %cst_10 [1] : vector<2x32xi32> to vector<2xi32>
    %44 = vector.shape_cast %43 : vector<2xi32> to vector<2x1xi32>
    %45 = vector.broadcast %4 : vector<1x32xi32> to vector<2x32xi32>
    %46 = vector.broadcast %44 : vector<2x1xi32> to vector<2x32xi32>
    %47 = arith.cmpi eq, %45, %46 : vector<2x32xi32>
    %48 = vector.broadcast %cst : f32 to vector<2x32xf32>
    %49 = arith.select %47, %48, %34 : vector<2x32xi1>, vector<2x32xf32>
    %c3_i32 = arith.constant 3 : i32
    %cst_11 = arith.constant dense<0xFF800000> : vector<2xf32>
    %50 = vector.multi_reduction <maximumf>, %49, %cst_11 [1] : vector<2x32xf32> to vector<2xf32>
    %51 = vector.shape_cast %50 : vector<2xf32> to vector<2x1xf32>
    %52 = vector.broadcast %51 : vector<2x1xf32> to vector<2x32xf32>
    %53 = arith.cmpf oeq, %49, %52 : vector<2x32xf32>
    %c32_i32_12 = arith.constant 32 : i32
    %54 = vector.shape_cast %4 : vector<1x32xi32> to vector<1x32xi32>
    %55 = vector.broadcast %54 : vector<1x32xi32> to vector<2x32xi32>
    %56 = vector.broadcast %c32_i32_12 : i32 to vector<2x32xi32>
    %57 = arith.select %53, %55, %56 : vector<2x32xi1>, vector<2x32xi32>
    %cst_13 = arith.constant dense<2147483647> : vector<2xi32>
    %58 = vector.multi_reduction <minsi>, %57, %cst_13 [1] : vector<2x32xi32> to vector<2xi32>
    %59 = vector.shape_cast %58 : vector<2xi32> to vector<2x1xi32>
    %60 = vector.broadcast %4 : vector<1x32xi32> to vector<2x32xi32>
    %61 = vector.broadcast %59 : vector<2x1xi32> to vector<2x32xi32>
    %62 = arith.cmpi eq, %60, %61 : vector<2x32xi32>
    %63 = vector.broadcast %cst : f32 to vector<2x32xf32>
    %64 = arith.select %62, %63, %49 : vector<2x32xi1>, vector<2x32xf32>
    %cst_14 = arith.constant 0xFF800000 : f32
    %65 = vector.broadcast %cst_14 : f32 to vector<2x32xf32>
    %66 = arith.cmpf oeq, %64, %65 : vector<2x32xf32>
    %c0_15 = arith.constant 0 : index
    %c0_16 = arith.constant 0 : index
    %67 = vector.load %arg1[%c0_15, %c0_16] : memref<2x32xf32, #tpu.memory_space<vmem>>, vector<2x32xf32>
    %cst_17 = arith.constant 0.000000e+00 : f32
    %68 = vector.broadcast %cst_17 : f32 to vector<2x32xf32>
    %69 = arith.select %66, %67, %68 : vector<2x32xi1>, vector<2x32xf32>
    %c0_18 = arith.constant 0 : index
    %c0_19 = arith.constant 0 : index
    %70 = vector.load %arg3[%c0_18, %c0_19] : memref<2x32xf32, #tpu.memory_space<vmem>>, vector<2x32xf32>
    tpu.vector_store %arg3[%c0_18, %c0_19], %69 {strides = array<i32>} : memref<2x32xf32, #tpu.memory_space<vmem>>, vector<2x32xf32>,
    return
  }
  func.func @transform_0(%arg0: i32) -> (i32, i32) {
    %c0_i32 = arith.constant 0 : i32
    %c0_i32_0 = arith.constant 0 : i32
    return %arg0, %c0_i32 : i32, i32
  }
  func.func @transform_1(%arg0: i32) -> (i32, i32) {
    %c0_i32 = arith.constant 0 : i32
    %c0_i32_0 = arith.constant 0 : i32
    %c0_i32_1 = arith.constant 0 : i32
    return %c0_i32, %c0_i32_0 : i32, i32
  }
  func.func @transform_2(%arg0: i32) -> (i32, i32) {
    %c0_i32 = arith.constant 0 : i32
    %c0_i32_0 = arith.constant 0 : i32
    return %arg0, %c0_i32 : i32, i32
  }
}

</mosaic_0001>

<bundles_post_ra>
// kernel: tpu_custom_call.1
= control target key start
LH: loop header
LB: loop body
LE: loop exit
PB: predicated region body
PF: predicated region fallthrough
CT: control target
= control target key end

     0   :  { %7 = vsyncpa [#allocation3], 0  ;;  %s290_s0 = inlined_call_operand.hbm [shape: f32[2,32], index: 0, kind: input, shape index: {}]   ;;  %s291_s1 = inlined_call_operand.hbm [shape: f32[1,32], index: 1, kind: input, shape index: {}]   ;;  %s292_s2 = inlined_call_operand.hbm [shape: f32[2,32], index: 2, kind: output, shape index: {}]  }
   0x1   :  { %8 = vsyncpa [#allocation6], 0 }
   0x2   :  { %9 = vsyncpa [#allocation4], 0  ;;  %s15_s11 = sshll.u32 %s290_s0, 4  ;;  %s240_s12 = smov [#allocation2]   ;;  %s16_s11 = int_to_ptr.hbm [resolvable:$true] %s15_s11 }
   0x3   :  { %s17_s13 = sshll.u32 %s240_s12, 4  ;;  %s26_s16 = sshll.u32 %s291_s1, 4  ;;  %s18_s13 = int_to_ptr.vmem [resolvable:$true] %s17_s13  ;;  %s27_s16 = int_to_ptr.hbm [resolvable:$true] %s26_s16 }
   0x4   :  { %20 = dma.hbm_to_vmem [thread:$0]  %s16_s11, 32, %s18_s13, [#allocation3]  }
   0x5   :  { %s241_s17 = smov [#allocation5]  }
   0x6   :  { %s28_s18 = sshll.u32 %s241_s17, 4  ;;  %s29_s18 = int_to_ptr.vmem [resolvable:$true] %s28_s18 }
   0x7   :  { %31 = dma.hbm_to_vmem [thread:$0]  %s27_s16, 16, %s29_s18, [#allocation6]  }
   0x8   :  { %234 = dma.done.wait [#allocation3], 32  }
   0x9   :  { %235 = vsyncadd [#allocation3], 4294967264 }
   0xa   :  { %236 = dma.done.wait [#allocation6], 16  }
   0xb   :  { %237 = vsyncadd [#allocation6], 4294967280  ;;  %v264_v0 = vld [vmem:[#allocation2] sm:$0x3]  ;;  %v161_v1 = vld [vmem:[#allocation5] ss:$0 sm:$0xff]  ;;  %v46_v4 = vlaneseq }
   0xc   :  { %vm48_vm0 = vcmask 254976   ;;  %v45_v2 = vmul.f32 %v161_v1, %v264_v0  ;;  %s242_s0 = smov [#allocation7]   ;;  %s147_s21 = sshll.u32 %s292_s2, 4  ;;  %s148_s21 = int_to_ptr.hbm [resolvable:$true] %s147_s21 }
   0xd   :  { %v268_v5 = vand.u32 127, %v46_v4  ;;  %s145_s1 = sshll.u32 %s242_s0, 4  ;;  %s146_s1 = int_to_ptr.vmem [resolvable:$true] %s145_s1 }
   0xe   :  { %v49_v3 = vsel %vm48_vm0, %v45_v2, -inf }
   0xf   :  { %50 = vmax.xlane.f32.xlu0 %v49_v3 }
  0x82   :  { %v51_v6 = vpop.xlane.xlu0 %50 }
  0x83   :  { %vm52_vm1 = vcmp.eq.f32.partialorder %v45_v2, %v51_v6 }
  0x84   :  { %v53_v7 = vsel %vm52_vm1, %v268_v5, 32 }
  0x85   :  { %v54_v8 = vsel %vm48_vm0, %v53_v7, 2147483647 }
  0x86   :  { %v56_v9 = vshra.s32 %v54_v8, 16  ;;  %v55_v11 = vand.u32 65535, %v54_v8 }
  0x88   :  { %v58_v10 = vcvt.s32.f32 %v56_v9  ;;  %v57_v13 = vcvt.s32.f32 %v55_v11 }
  0x8a   :  { %59 = vmin.xlane.f32.xlu0 %v58_v10 }
  0xfd   :  { %v60_v12 = vpop.xlane.xlu0 %59 }
  0xfe   :  { %vm61_vm2 = vcmp.eq.f32.partialorder %v58_v10, %v60_v12  ;;  %v66_v15 = vcvt.f32.s32 %v60_v12 }
  0xff   :  { %v62_v14 = vsel %vm61_vm2, %v57_v13, inf }
 0x100   :  { %63 = vmin.xlane.f32.xlu1 %v62_v14  ;;  %v67_v17 = vshll.u32 %v66_v15, 16 }
 0x173   :  { %v64_v16 = vpop.xlane.xlu1 %63 }
 0x174   :  { %v65_v18 = vcvt.f32.s32 %v64_v16 }
 0x176   :  { %v68_v19 = vadd.s32 %v67_v17, %v65_v18 }
 0x178   :  { %vm69_vm3 = vcmp.eq.s32.totalorder %v268_v5, %v68_v19 }
 0x179   :  { %v70_v20 = vsel %vm69_vm3, -inf, %v45_v2 }
 0x17a   :  { %v71_v21 = vsel %vm48_vm0, %v70_v20, -inf }
 0x17b   :  { %72 = vmax.xlane.f32.xlu1 %v71_v21 }
 0x1ee   :  { %v73_v22 = vpop.xlane.xlu1 %72 }
 0x1ef   :  { %vm74_vm4 = vcmp.eq.f32.partialorder %v70_v20, %v73_v22 }
 0x1f0   :  { %v75_v23 = vsel %vm74_vm4, %v268_v5, 32 }
 0x1f1   :  { %v76_v24 = vsel %vm48_vm0, %v75_v23, 2147483647 }
 0x1f2   :  { %v78_v25 = vshra.s32 %v76_v24, 16  ;;  %v77_v27 = vand.u32 65535, %v76_v24 }
 0x1f4   :  { %v80_v26 = vcvt.s32.f32 %v78_v25  ;;  %v79_v29 = vcvt.s32.f32 %v77_v27 }
 0x1f6   :  { %81 = vmin.xlane.f32.xlu2 %v80_v26 }
 0x269   :  { %v82_v28 = vpop.xlane.xlu2 %81 }
 0x26a   :  { %vm83_vm5 = vcmp.eq.f32.partialorder %v80_v26, %v82_v28  ;;  %v88_v31 = vcvt.f32.s32 %v82_v28 }
 0x26b   :  { %v84_v30 = vsel %vm83_vm5, %v79_v29, inf }
 0x26c   :  { %85 = vmin.xlane.f32.xlu2 %v84_v30  ;;  %v89_v33 = vshll.u32 %v88_v31, 16 }
 0x2df   :  { %v86_v32 = vpop.xlane.xlu2 %85 }
 0x2e0   :  { %v87_v34 = vcvt.f32.s32 %v86_v32 }
 0x2e2   :  { %v90_v35 = vadd.s32 %v89_v33, %v87_v34 }
 0x2e4   :  { %vm91_vm6 = vcmp.eq.s32.totalorder %v268_v5, %v90_v35 }
 0x2e5   :  { %v92_v36 = vsel %vm91_vm6, -inf, %v70_v20 }
 0x2e6   :  { %v93_v37 = vsel %vm48_vm0, %v92_v36, -inf }
 0x2e7   :  { %94 = vmax.xlane.f32.xlu0 %v93_v37 }
 0x35a   :  { %v95_v38 = vpop.xlane.xlu0 %94 }
 0x35b   :  { %vm96_vm7 = vcmp.eq.f32.partialorder %v92_v36, %v95_v38 }
 0x35c   :  { %v97_v39 = vsel %vm96_vm7, %v268_v5, 32 }
 0x35d   :  { %v98_v40 = vsel %vm48_vm0, %v97_v39, 2147483647 }
 0x35e   :  { %v100_v41 = vshra.s32 %v98_v40, 16  ;;  %v99_v43 = vand.u32 65535, %v98_v40 }
 0x360   :  { %v102_v42 = vcvt.s32.f32 %v100_v41  ;;  %v101_v45 = vcvt.s32.f32 %v99_v43 }
 0x362   :  { %103 = vmin.xlane.f32.xlu1 %v102_v42 }
 0x3d5   :  { %v104_v44 = vpop.xlane.xlu1 %103 }
 0x3d6   :  { %vm105_vm8 = vcmp.eq.f32.partialorder %v102_v42, %v104_v44  ;;  %v110_v47 = vcvt.f32.s32 %v104_v44 }
 0x3d7   :  { %v106_v46 = vsel %vm105_vm8, %v101_v45, inf }
 0x3d8   :  { %107 = vmin.xlane.f32.xlu2 %v106_v46  ;;  %v111_v49 = vshll.u32 %v110_v47, 16 }
 0x44b   :  { %v108_v48 = vpop.xlane.xlu2 %107 }
 0x44c   :  { %v109_v50 = vcvt.f32.s32 %v108_v48 }
 0x44e   :  { %v112_v51 = vadd.s32 %v111_v49, %v109_v50 }
 0x450   :  { %vm113_vm9 = vcmp.eq.s32.totalorder %v268_v5, %v112_v51 }
 0x451   :  { %v114_v52 = vsel %vm113_vm9, -inf, %v92_v36 }
 0x452   :  { %v115_v53 = vsel %vm48_vm0, %v114_v52, -inf }
 0x453   :  { %116 = vmax.xlane.f32.xlu0 %v115_v53 }
 0x4c6   :  { %v117_v54 = vpop.xlane.xlu0 %116 }
 0x4c7   :  { %vm118_vm10 = vcmp.eq.f32.partialorder %v114_v52, %v117_v54 }
 0x4c8   :  { %v119_v55 = vsel %vm118_vm10, %v268_v5, 32 }
 0x4c9   :  { %v120_v56 = vsel %vm48_vm0, %v119_v55, 2147483647 }
 0x4ca   :  { %v122_v57 = vshra.s32 %v120_v56, 16  ;;  %v121_v59 = vand.u32 65535, %v120_v56 }
 0x4cc   :  { %v124_v58 = vcvt.s32.f32 %v122_v57  ;;  %v123_v61 = vcvt.s32.f32 %v121_v59 }
 0x4ce   :  { %125 = vmin.xlane.f32.xlu1 %v124_v58 }
 0x541   :  { %v126_v60 = vpop.xlane.xlu1 %125 }
 0x542   :  { %vm127_vm11 = vcmp.eq.f32.partialorder %v124_v58, %v126_v60  ;;  %v132_v63 = vcvt.f32.s32 %v126_v60 }
 0x543   :  { %v128_v62 = vsel %vm127_vm11, %v123_v61, inf }
 0x544   :  { %129 = vmin.xlane.f32.xlu2 %v128_v62  ;;  %v133_v2 = vshll.u32 %v132_v63, 16 }
 0x5b7   :  { %v130_v1 = vpop.xlane.xlu2 %129 }
 0x5b8   :  { %v131_v3 = vcvt.f32.s32 %v130_v1 }
 0x5ba   :  { %v134_v4 = vadd.s32 %v133_v2, %v131_v3 }
 0x5bc   :  { %vm135_vm12 = vcmp.eq.s32.totalorder %v268_v5, %v134_v4 }
 0x5bd   :  { %v136_v6 = vsel %vm135_vm12, -inf, %v114_v52 }
 0x5be   :  { %vm137_vm13 = vcmp.eq.f32.partialorder %v136_v6, -inf }
 0x5bf   :  { %v138_v7 = vsel %vm137_vm13, %v264_v0, 0.0 }
 0x5c0   :  { %139 = vst.msk [vmem:[#allocation7] sm:$0x3] %vm48_vm0, %v138_v7 }
 0x5c1   :  { %150 = dma.vmem_to_hbm [thread:$0]  %s146_s1, 32, %s148_s21, [#allocation4]  }
 0x5c2   :  { %238 = dma.done.wait [#allocation4], 32  }
 0x5c3   :  { %239 = vsyncadd [#allocation4], 4294967264 }
 0x5c4   :  { %155 = vsyncpa [#allocation3], 1 }
 0x5c5   :  { %156 = vsyncpa [#allocation6], 1 }
 0x5c6   :  { %157 = vsyncpa [#allocation4], 1 }

</bundles_post_ra>
